<compile_context>
chip_gen: v7x
topology: tpu7x:2x2x1
jax: 0.10.0
libtpu: 0.0.40
codegen_flags: <defaults>
</compile_context>

<pallas_src>
import numpy as np
import jax
import jax.numpy as jnp
from jax.experimental import pallas as pl
from jax.experimental.pallas import tpu as pltpu  # noqa: F401  (TPU backend)

# ---------------- problem sizes (small, consistent with the module) ----------
B    = 2          # batch
NE   = 8          # number of entities
NA   = 4          # n_agents (first NA entities are the agents, REFIL layout)
ED   = 16         # entity_shape (entity_dim)
HE   = 32         # hypernet_embed
NH   = 4          # attn_n_heads
HD   = HE // NH   # head dim
MED  = 8          # mixing_embed_dim
BNE  = B * NE     # flattened entity rows (keys/values)
BNA  = B * NA     # flattened agent rows  (queries / outputs)
OUTL = 128        # padded fc2 output lanes (lane-dense store)

# ---------------- data-slab layout (per-call tensor, (24, 17) f32) ----------
DSLAB_ROWS = BNE + BNA          # 16 entity rows + 8 mask rows
DSLAB_COLS = BNE + 1            # addmask (16) + keep column (1)

# ---------------- weight-slab layout (parameters, (232, 128) f32) -----------
R_W1   = 0                      # (ED, HE)           rows   0..15
R_B1   = 16                     # (1, HE)            row   16
R_BOUT = 24                     # (1, HE)            row   24
R_B2   = 32                     # (1, OUTL)          row   32
R_W2   = 40                     # (HE, OUTL)         rows  40..71
R_QKV  = 72                     # (NH*HE, 3*HD)      rows  72..199
R_WOUT = 200                    # (NH*HD, HE)        rows 200..231
WSLAB_ROWS = R_WOUT + NH * HD   # 232


def _hypernet_kernel(dslab_ref, wslab_ref, out_ref):
    """Whole batch in one invocation; two packed VMEM slabs in, one slab out."""
    f32 = jnp.float32

    # ---- carve the data slab (static slices, zero-cost views) --------------
    ent     = dslab_ref[0:BNE, 0:ED]                       # (BNE, ED)
    addmask = dslab_ref[BNE:BNE + BNA, 0:BNE]              # (BNA, BNE)  0 / -1e30
    keepcol = dslab_ref[BNE:BNE + BNA, BNE:BNE + 1]        # (BNA, 1)    1-agent_mask

    # ---- carve the weight slab (sublane-aligned slices + no-op reshapes) ---
    w1     = wslab_ref[R_W1:R_W1 + ED, 0:HE]               # (ED, HE)
    b1     = wslab_ref[R_B1:R_B1 + 1, 0:HE]                # (1, HE)
    bout   = wslab_ref[R_BOUT:R_BOUT + 1, 0:HE]            # (1, HE)
    b2p    = wslab_ref[R_B2:R_B2 + 1, 0:OUTL]              # (1, OUTL)
    w2p    = wslab_ref[R_W2:R_W2 + HE, 0:OUTL]             # (HE, OUTL)
    wqkv   = wslab_ref[R_QKV:R_QKV + NH * HE, 0:3 * HD].reshape(NH, HE, 3 * HD)
    wout_h = wslab_ref[R_WOUT:R_WOUT + NH * HD, 0:HE].reshape(NH, HD, HE)

    # ---- fc1 + relu over all B*NE rows (one MXU matmul) ---------------------
    x1 = jnp.dot(ent, w1, preferred_element_type=f32) + b1
    x1 = jnp.maximum(x1, 0.0)                              # (BNE, HE)

    # ---- fused head-major QKV projection (4 pushes instead of 12) ----------
    x1_h = jnp.broadcast_to(x1[None], (NH, BNE, HE))       # (NH, BNE, HE)
    qkv = jnp.einsum('hne,hed->hnd', x1_h, wqkv,
                     preferred_element_type=f32)           # (NH, BNE, 3HD)
    q = qkv[:, :BNA, 0:HD]                                 # agents only; scale folded
    k = qkv[:, :, HD:2 * HD]                               # (NH, BNE, HD)
    v = qkv[:, :, 2 * HD:3 * HD]                           # (NH, BNE, HD)

    # ---- masked softmax attention (additive bias precomputed host-side) ----
    logits = jnp.einsum('hqd,hkd->hqk', q, k,
                        preferred_element_type=f32) + addmask[None]
    m = jnp.max(logits, axis=-1, keepdims=True)
    p = jnp.exp(logits - m)
    s = jnp.sum(p, axis=-1, keepdims=True)
    r = pl.reciprocal(s, approx=True)                      # EUP slot
    r = r * (2.0 - s * r)                                  # one Newton step -> full f32
    w = p * r                                              # (NH, BNA, BNE)

    attn_h = jnp.einsum('hqk,hkd->hqd', w, v,
                        preferred_element_type=f32)        # (NH, BNA, HD)

    # ---- out projection; head concat folded into per-head matmul + sum -----
    proj = jnp.einsum('hqd,hde->hqe', attn_h, wout_h,
                      preferred_element_type=f32)          # (NH, BNA, HE)
    attn_out = jnp.sum(proj, axis=0) + bout                # (BNA, HE)

    # (dropout / norm are Identity for this config; post_mask rows are zeroed
    #  by the final keepcol multiply, so no intermediate select is needed.)

    # ---- fc2 (lane-padded) + final agent masking, lane-dense store ---------
    x3 = jnp.dot(attn_out, w2p, preferred_element_type=f32) + b2p
    x3 = x3 * keepcol                                      # (BNA, OUTL)
    out_ref[...] = x3.astype(out_ref.dtype)


# ---- static cost estimate reflecting padded (128-lane) DMA traffic ----------
_FLOPS = 2 * (BNE * ED * HE                 # fc1
              + NH * BNE * HE * (3 * HD)    # qkv projection
              + NH * BNA * BNE * HD         # logits
              + NH * BNA * BNE * HD         # attn @ v
              + NH * BNA * HD * HE          # out projection
              + BNA * HE * OUTL)            # fc2 (padded)
_TRANS = NH * BNA * BNE + NH * BNA
_BYTES = 4 * (DSLAB_ROWS * 128 + WSLAB_ROWS * 128 + BNA * OUTL)
_COST = pl.CostEstimate(flops=_FLOPS, transcendentals=_TRANS, bytes_accessed=_BYTES)


@jax.jit
def attention_hypernet(entities, entity_mask, params):
    """entities: (B, NE, ED) f32; entity_mask: (B, NE) f32 0/1 (1 == masked)."""
    w1, b1, win, wout, bout, w2, b2 = params
    f32 = jnp.float32

    # ---- weight pre-packing (layout plumbing; once per checkpoint in practice)
    inv_sqrt_hd = f32(1.0 / np.sqrt(HD))
    wq = win[:, 0 * HE:1 * HE].reshape(HE, NH, HD).transpose(1, 0, 2) * inv_sqrt_hd
    wk = win[:, 1 * HE:2 * HE].reshape(HE, NH, HD).transpose(1, 0, 2)
    wv = win[:, 2 * HE:3 * HE].reshape(HE, NH, HD).transpose(1, 0, 2)
    wqkv_flat = jnp.concatenate([wq, wk, wv], axis=-1).reshape(NH * HE, 3 * HD)
    wout_flat = wout.reshape(NH * HD, HE)

    wslab = jnp.zeros((WSLAB_ROWS, 128), f32)
    wslab = wslab.at[R_W1:R_W1 + ED, 0:HE].set(w1)
    wslab = wslab.at[R_B1:R_B1 + 1, 0:HE].set(b1)
    wslab = wslab.at[R_BOUT:R_BOUT + 1, 0:HE].set(bout)
    wslab = wslab.at[R_B2:R_B2 + 1, 0:MED].set(b2)           # rest of row = zero pad
    wslab = wslab.at[R_W2:R_W2 + HE, 0:MED].set(w2)          # lanes MED..127 zero pad
    wslab = wslab.at[R_QKV:R_QKV + NH * HE, 0:3 * HD].set(wqkv_flat)
    wslab = wslab.at[R_WOUT:R_WOUT + NH * HD, 0:HE].set(wout_flat)

    # ---- per-call data slab: agent-first row order + additive mask ----------
    ent_ag  = entities[:, :NA, :].reshape(BNA, ED)
    ent_oth = entities[:, NA:, :].reshape(B * (NE - NA), ED)
    ent_perm = jnp.concatenate([ent_ag, ent_oth], axis=0)    # (BNE, ED)

    em = entity_mask.astype(f32)
    am = em[:, :NA].reshape(BNA)                             # agent mask (1 == masked)
    em_perm = jnp.concatenate([am, em[:, NA:].reshape(B * (NE - NA))], axis=0)
    bid_ag  = jnp.repeat(jnp.arange(B, dtype=jnp.int32), NA)
    bid_all = jnp.concatenate(
        [bid_ag, jnp.repeat(jnp.arange(B, dtype=jnp.int32), NE - NA)], axis=0)

    pre   = 1.0 - (1.0 - am)[:, None] * (1.0 - em_perm)[None, :]   # torch bmm formula
    cross = (bid_ag[:, None] != bid_all[None, :]).astype(f32)      # no cross-batch attn
    addmask = jnp.maximum(pre, cross) * f32(-1e30)                 # (BNA, BNE)
    keep = 1.0 - am                                                # (BNA,)

    dslab = jnp.zeros((DSLAB_ROWS, DSLAB_COLS), f32)
    dslab = dslab.at[:BNE, :ED].set(ent_perm)
    dslab = dslab.at[BNE:, :BNE].set(addmask)
    dslab = dslab.at[BNE:, BNE].set(keep)

    # NOTE: gridless single invocation (B=2 on one TensorCore).  On v7x a
    # grid=(B,) with dimension_semantics=("parallel",) would engage the 2nd TC.
    out_full = pl.pallas_call(
        _hypernet_kernel,
        out_shape=jax.ShapeDtypeStruct((BNA, OUTL), jnp.float32),
        cost_estimate=_COST,
    )(dslab, wslab)

    # Drop the zero-padded lanes; rows are already agent-major (B, NA) order.
    return out_full[:, :MED].reshape(B, NA, MED)


# ---------------- pure-JAX reference (mirrors the torch forward) -------------
def reference_forward(entities, entity_mask, params):
    w1, b1, win, wout, bout, w2, b2 = params
    x1 = jax.nn.relu(entities @ w1 + b1)                             # (B, NE, HE)
    qkv = x1 @ win                                                   # (B, NE, 3HE)
    q = qkv[:, :NA, :HE]
    k = qkv[:, :, HE:2 * HE]
    v = qkv[:, :, 2 * HE:]
    am = entity_mask[:, :NA]
    pre = 1.0 - (1.0 - am)[:, :, None] * (1.0 - entity_mask)[:, None, :]
    blocked = pre > 0.0                                              # (B, NA, NE)

    qh = q.reshape(B, NA, NH, HD)
    kh = k.reshape(B, NE, NH, HD)
    vh = v.reshape(B, NE, NH, HD)
    logits = jnp.einsum('bqhd,bkhd->bhqk', qh, kh) / np.sqrt(HD)
    logits = jnp.where(blocked[:, None], -jnp.inf, logits)
    m = jnp.max(logits, axis=-1, keepdims=True)
    p = jnp.exp(logits - m)
    w = p / jnp.sum(p, axis=-1, keepdims=True)
    w = jnp.where(jnp.isnan(w), 0.0, w)
    attn = jnp.einsum('bhqk,bkhd->bqhd', w, vh).reshape(B, NA, HE)
    attn = attn @ wout + bout
    attn = jnp.where(am[:, :, None] > 0.0, 0.0, attn)
    x3 = attn @ w2 + b2
    x3 = jnp.where(am[:, :, None] > 0.0, 0.0, x3)
    return x3


def make_params(key):
    def uniform(k, shape, fan_in):
        bound = 1.0 / np.sqrt(fan_in)
        return jax.random.uniform(k, shape, jnp.float32, -bound, bound)

    ks = jax.random.split(key, 7)
    w1   = uniform(ks[0], (ED, HE), ED)
    b1   = uniform(ks[1], (1, HE), ED)
    win  = uniform(ks[2], (HE, 3 * HE), HE)        # in_trans (bias=False)
    wout = uniform(ks[3], (HE, HE), HE)            # out_trans
    bout = uniform(ks[4], (1, HE), HE)
    w2   = uniform(ks[5], (HE, MED), HE)
    b2   = uniform(ks[6], (1, MED), HE)
    return (w1, b1, win, wout, bout, w2, b2)


if __name__ == "__main__":
    key = jax.random.PRNGKey(0)
    k_e, k_p = jax.random.split(key)

    entities = jax.random.normal(k_e, (B, NE, ED), jnp.float32)
    # 1 == masked/inactive. Mask out one agent and a couple of entities.
    entity_mask = jnp.zeros((B, NE), jnp.float32)
    entity_mask = entity_mask.at[0, 3].set(1.0)    # agent 3 of batch 0 inactive
    entity_mask = entity_mask.at[0, 6:].set(1.0)   # some non-agent entities inactive
    entity_mask = entity_mask.at[1, 7].set(1.0)

    params = make_params(k_p)

    out = attention_hypernet(entities, entity_mask, params)
    out = jax.block_until_ready(out)

    ref = reference_forward(entities, entity_mask, params)
    np.testing.assert_allclose(np.asarray(out), np.asarray(ref), rtol=1e-4, atol=1e-4)

    print("KERNEL_OK")
</pallas_src>

<mosaic_0001>
module attributes {stable_mosaic.version = 11 : i64} {
  func.func @_hypernet_kernel(%arg0: memref<24x17xf32, #tpu.memory_space<vmem>>, %arg1: memref<232x128xf32, #tpu.memory_space<vmem>>, %arg2: memref<8x128xf32, #tpu.memory_space<vmem>>) attributes {dimension_semantics = [], scalar_prefetch = 0 : i64, scratch_operands = 0 : i64, tpu.core_type = #tpu.core_type<tc>} {
    %c0 = arith.constant 0 : index
    %c0_0 = arith.constant 0 : index
    %0 = vector.load %arg0[%c0, %c0_0] : memref<24x17xf32, #tpu.memory_space<vmem>>, vector<16x16xf32>
    %c16 = arith.constant 16 : index
    %c0_1 = arith.constant 0 : index
    %1 = vector.load %arg0[%c16, %c0_1] : memref<24x17xf32, #tpu.memory_space<vmem>>, vector<8x16xf32>
    %c16_2 = arith.constant 16 : index
    %c16_3 = arith.constant 16 : index
    %2 = vector.load %arg0[%c16_2, %c16_3] : memref<24x17xf32, #tpu.memory_space<vmem>>, vector<8x1xf32>
    %c0_4 = arith.constant 0 : index
    %c0_5 = arith.constant 0 : index
    %3 = vector.load %arg1[%c0_4, %c0_5] : memref<232x128xf32, #tpu.memory_space<vmem>>, vector<16x32xf32>
    %c16_6 = arith.constant 16 : index
    %c0_7 = arith.constant 0 : index
    %4 = vector.load %arg1[%c16_6, %c0_7] : memref<232x128xf32, #tpu.memory_space<vmem>>, vector<1x32xf32>
    %c24 = arith.constant 24 : index
    %c0_8 = arith.constant 0 : index
    %5 = vector.load %arg1[%c24, %c0_8] : memref<232x128xf32, #tpu.memory_space<vmem>>, vector<1x32xf32>
    %c32 = arith.constant 32 : index
    %c0_9 = arith.constant 0 : index
    %6 = vector.load %arg1[%c32, %c0_9] : memref<232x128xf32, #tpu.memory_space<vmem>>, vector<1x128xf32>
    %c40 = arith.constant 40 : index
    %c0_10 = arith.constant 0 : index
    %7 = vector.load %arg1[%c40, %c0_10] : memref<232x128xf32, #tpu.memory_space<vmem>>, vector<32x128xf32>
    %c72 = arith.constant 72 : index
    %c0_11 = arith.constant 0 : index
    %8 = vector.load %arg1[%c72, %c0_11] : memref<232x128xf32, #tpu.memory_space<vmem>>, vector<128x24xf32>
    %9 = vector.shape_cast %8 : vector<128x24xf32> to vector<4x32x24xf32>
    %c200 = arith.constant 200 : index
    %c0_12 = arith.constant 0 : index
    %10 = vector.load %arg1[%c200, %c0_12] : memref<232x128xf32, #tpu.memory_space<vmem>>, vector<32x32xf32>
    %11 = vector.shape_cast %10 : vector<32x32xf32> to vector<4x8x32xf32>
    %cst = arith.constant dense<0.000000e+00> : vector<16x32xf32>
    %12 = tpu.matmul %0, %3, %cst {dimension_numbers = #tpu.dot_dimension_numbers<[1], [0], [0], [1], [0, 0, 1, 1], [], []>} : vector<16x16xf32>, vector<16x32xf32>, vector<16x32xf32> -> vector<16x32xf32>
    %13 = vector.broadcast %4 : vector<1x32xf32> to vector<16x32xf32>
    %14 = arith.addf %12, %13 : vector<16x32xf32>
    %cst_13 = arith.constant 0.000000e+00 : f32
    %15 = vector.broadcast %cst_13 : f32 to vector<16x32xf32>
    %16 = arith.maximumf %14, %15 : vector<16x32xf32>
    %17 = vector.shape_cast %16 : vector<16x32xf32> to vector<1x16x32xf32>
    %18 = vector.shape_cast %17 : vector<1x16x32xf32> to vector<1x16x32xf32>
    %19 = vector.broadcast %18 : vector<1x16x32xf32> to vector<4x16x32xf32>
    "tpu.trace_start"() <{level = 10 : i32, message = "hne,hed->hnd"}> : () -> ()
    %cst_14 = arith.constant dense<0.000000e+00> : vector<4x16x24xf32>
    %20 = tpu.matmul %19, %9, %cst_14 {dimension_numbers = #tpu.dot_dimension_numbers<[2], [1], [1], [2], [0, 0, 0, 1, 1, 2], [0], [0]>} : vector<4x16x32xf32>, vector<4x32x24xf32>, vector<4x16x24xf32> -> vector<4x16x24xf32>
    "tpu.trace_stop"() : () -> ()
    %21 = vector.extract_strided_slice %20 {offsets = [0, 0, 0], sizes = [4, 8, 8], strides = [1, 1, 1]} : vector<4x16x24xf32> to vector<4x8x8xf32>
    %22 = vector.extract_strided_slice %20 {offsets = [0, 0, 8], sizes = [4, 16, 8], strides = [1, 1, 1]} : vector<4x16x24xf32> to vector<4x16x8xf32>
    %23 = vector.extract_strided_slice %20 {offsets = [0, 0, 16], sizes = [4, 16, 8], strides = [1, 1, 1]} : vector<4x16x24xf32> to vector<4x16x8xf32>
    "tpu.trace_start"() <{level = 10 : i32, message = "hqd,hkd->hqk"}> : () -> ()
    %cst_15 = arith.constant dense<0.000000e+00> : vector<4x8x16xf32>
    %24 = tpu.matmul %21, %22, %cst_15 {dimension_numbers = #tpu.dot_dimension_numbers<[2], [2], [1], [1], [0, 0, 0, 1, 1, 1], [0], [0]>} : vector<4x8x8xf32>, vector<4x16x8xf32>, vector<4x8x16xf32> -> vector<4x8x16xf32>
    "tpu.trace_stop"() : () -> ()
    %25 = vector.shape_cast %1 : vector<8x16xf32> to vector<1x8x16xf32>
    %26 = vector.broadcast %25 : vector<1x8x16xf32> to vector<4x8x16xf32>
    %27 = arith.addf %24, %26 : vector<4x8x16xf32>
    %cst_16 = arith.constant dense<0xFF800000> : vector<4x8xf32>
    %28 = vector.multi_reduction <maximumf>, %27, %cst_16 [2] : vector<4x8x16xf32> to vector<4x8xf32>
    %29 = vector.shape_cast %28 : vector<4x8xf32> to vector<4x8x1xf32>
    %30 = vector.broadcast %29 : vector<4x8x1xf32> to vector<4x8x16xf32>
    %31 = arith.subf %27, %30 : vector<4x8x16xf32>
    %32 = math.exp %31 : vector<4x8x16xf32>
    %cst_17 = arith.constant dense<0.000000e+00> : vector<4x8xf32>
    %33 = vector.multi_reduction <add>, %32, %cst_17 [2] : vector<4x8x16xf32> to vector<4x8xf32>
    %34 = vector.shape_cast %33 : vector<4x8xf32> to vector<4x8x1xf32>
    %35 = tpu.reciprocal %34 {approx = true} : vector<4x8x1xf32> -> vector<4x8x1xf32>
    %36 = arith.mulf %34, %35 : vector<4x8x1xf32>
    %cst_18 = arith.constant 2.000000e+00 : f32
    %37 = vector.broadcast %cst_18 : f32 to vector<4x8x1xf32>
    %38 = arith.subf %37, %36 : vector<4x8x1xf32>
    %39 = arith.mulf %35, %38 : vector<4x8x1xf32>
    %40 = vector.broadcast %39 : vector<4x8x1xf32> to vector<4x8x16xf32>
    %41 = arith.mulf %32, %40 : vector<4x8x16xf32>
    "tpu.trace_start"() <{level = 10 : i32, message = "hqk,hkd->hqd"}> : () -> ()
    %cst_19 = arith.constant dense<0.000000e+00> : vector<4x8x8xf32>
    %42 = tpu.matmul %41, %23, %cst_19 {dimension_numbers = #tpu.dot_dimension_numbers<[2], [1], [1], [2], [0, 0, 0, 1, 1, 2], [0], [0]>} : vector<4x8x16xf32>, vector<4x16x8xf32>, vector<4x8x8xf32> -> vector<4x8x8xf32>
    "tpu.trace_stop"() : () -> ()
    "tpu.trace_start"() <{level = 10 : i32, message = "hqd,hde->hqe"}> : () -> ()
    %cst_20 = arith.constant dense<0.000000e+00> : vector<4x8x32xf32>
    %43 = tpu.matmul %42, %11, %cst_20 {dimension_numbers = #tpu.dot_dimension_numbers<[2], [1], [1], [2], [0, 0, 0, 1, 1, 2], [0], [0]>} : vector<4x8x8xf32>, vector<4x8x32xf32>, vector<4x8x32xf32> -> vector<4x8x32xf32>
    "tpu.trace_stop"() : () -> ()
    %cst_21 = arith.constant dense<0.000000e+00> : vector<8x32xf32>
    %44 = vector.multi_reduction <add>, %43, %cst_21 [0] : vector<4x8x32xf32> to vector<8x32xf32>
    %45 = vector.broadcast %5 : vector<1x32xf32> to vector<8x32xf32>
    %46 = arith.addf %44, %45 : vector<8x32xf32>
    %cst_22 = arith.constant dense<0.000000e+00> : vector<8x128xf32>
    %47 = tpu.matmul %46, %7, %cst_22 {dimension_numbers = #tpu.dot_dimension_numbers<[1], [0], [0], [1], [0, 0, 1, 1], [], []>} : vector<8x32xf32>, vector<32x128xf32>, vector<8x128xf32> -> vector<8x128xf32>
    %48 = vector.broadcast %6 : vector<1x128xf32> to vector<8x128xf32>
    %49 = arith.addf %47, %48 : vector<8x128xf32>
    %50 = vector.broadcast %2 : vector<8x1xf32> to vector<8x128xf32>
    %51 = arith.mulf %49, %50 : vector<8x128xf32>
    %c0_23 = arith.constant 0 : index
    %c0_24 = arith.constant 0 : index
    %52 = vector.load %arg2[%c0_23, %c0_24] : memref<8x128xf32, #tpu.memory_space<vmem>>, vector<8x128xf32>
    tpu.vector_store %arg2[%c0_23, %c0_24], %51 {strides = array<i32>} : memref<8x128xf32, #tpu.memory_space<vmem>>, vector<8x128xf32>,
    return
  }
}

</mosaic_0001>

<bundles_post_ra>
// kernel: ne.8
= control target key start
LH: loop header
LB: loop body
LE: loop exit
PB: predicated region body
PF: predicated region fallthrough
CT: control target
= control target key end

     0   :  { %vm7_vm0 = vcmask 31744   ;;  %vm13_vm1 = vcmask 64544   ;;  %s39_s0 = inlined_call_operand.vmem [shape: s32[2,4], index: 0, kind: input, shape index: {}]   ;;  %s40_s1 = inlined_call_operand.vmem [shape: s32[8], index: 1, kind: output, shape index: {}]  }
   0x1   :  { %v4_v0 = vld [vmem:[%s39_s0] sm:$0x3]  ;;  %s22_s0 = smov 4  }
   0x2   :  { %5 = vst [vmem:[#allocation1] sm:$0x3] %v4_v0 }
   0x9   :  { %v10_v1 = vld [vmem:[#allocation1 + $0x1] sm:$0x1]   ;;  %v6_v2 = vld [vmem:[#allocation1] sm:$0x1]  }
   0xa   :  { %11 = vrot.lane.b32.xlu0 %v10_v1, %s22_s0  ;;  %8 = vst.msk [vmem:[#allocation0] sm:$0x1] %vm7_vm0, %v6_v2  }
  0x7c   :  { %v12_v3 = vpop.permute.xlu0 %11  }
  0x7d   :  { %14 = vst.msk [vmem:[#allocation0] sm:$0x1] %vm13_vm1, %v12_v3  }
  0x84   :  { %v18_v4 = vld [vmem:[#allocation0] sm:$0x1] }
  0x85   :  { %20 = vst [vmem:[%s40_s1] sm:$0x1] %v18_v4 }

// kernel: attention_hypernet.1
= control target key start
LH: loop header
LB: loop body
LE: loop exit
PB: predicated region body
PF: predicated region fallthrough
CT: control target
= control target key end

     0   :  { %vm48_vm0 = vcmask 130048   ;;  %s2183_s0 = inlined_call_operand.vmem [shape: f32[24,17], index: 0, kind: input, shape index: {}]   ;;  %s2184_s1 = inlined_call_operand.vmem [shape: f32[232,128], index: 1, kind: input, shape index: {}]   ;;  %s2185_s2 = inlined_call_operand.hbm [shape: f32[8,128], index: 2, kind: output, shape index: {}]  }
   0x1   :  { %v15_v0 = vld [vmem:[%s2184_s1] sm:$0xff]  ;;  %v16_v1 = vld [vmem:[%s2184_s1 + $0x8] sm:$0xff]  ;;  %v25_v5 = vld [vmem:[%s2184_s1 + $0x50] sm:$0xff] }
   0x2   :  { %v12_v2 = vld [vmem:[%s2183_s0] sm:$0xff]  ;;  %v1779_v3 = vpack.c.bf16 %v16_v1, %v15_v0  ;;  %v24_v4 = vld [vmem:[%s2184_s1 + $0x48] sm:$0xff]  ;;  %v29_v8 = vld [vmem:[%s2184_s1 + $0x70] sm:$0xff] }
   0x3   :  { %1645 = vmatprep.mubr.msk.f32.mxu0 %vm48_vm0, %v12_v2  ;;  %v1783_v6 = vpack.c.bf16 %v25_v5, %v24_v4  ;;  %v28_v7 = vld [vmem:[%s2184_s1 + $0x68] sm:$0xff] }
   0x4   :  { %7 = vsyncpa [#allocation3], 0  ;;  %1780 = vmatprep.subr.bf16.mxu0 %v1779_v3  ;;  %v1791_v9 = vpack.c.bf16 %v29_v8, %v28_v7  ;;  %v13_v10 = vld [vmem:[%s2183_s0 + $0x8] sm:$0xff]  ;;  %v26_v11 = vld [vmem:[%s2184_s1 + $0x58] sm:$0xff]  ;;  %vm132_vm1 = vcmask 261120   ;;  %v1937_v36 = vmov 0.0|0.0  }
   0x5   :  { %1782 = vmatpush3.bf16.msra.mxu0 %v1779_v3  ;;  %1784 = vmatprep.subr.bf16.mxu1 %v1783_v6  ;;  %v27_v12 = vld [vmem:[%s2184_s1 + $0x60] sm:$0xff]  ;;  %v30_v13 = vld [vmem:[%s2184_s1 + $0x78] sm:$0xff]  ;;  %v32_v17 = vld [vmem:[%s2184_s1 + $0x88] sm:$0xff]  ;;  %vm1938_vm2 = vmmov 0   ;;  %v1939_v43 = vmov 0.0   ;;  %s1940_s23 = smov 120  }
   0x6   :  { %1792 = vmatprep.subr.bf16.mxu0 %v1791_v9  ;;  %1786 = vmatpush3.bf16.msra.mxu1 %v1783_v6  ;;  %v1787_v14 = vpack.c.bf16 %v27_v12, %v26_v11  ;;  %v31_v15 = vld [vmem:[%s2184_s1 + $0x80] sm:$0xff]  ;;  %v33_v18 = vld [vmem:[%s2184_s1 + $0x90] sm:$0xff]  ;;  %v36_v19 = vld [vmem:[%s2184_s1 + $0xa8] sm:$0xff]  ;;  %vm445_vm3 = vcmask 64512   ;;  %s1943_s18 = smov [#allocation2]  }
   0x7   :  { %v1795_v16 = vpack.c.bf16 %v31_v15, %v30_v13  ;;  %v1799_v20 = vpack.c.bf16 %v33_v18, %v32_v17  ;;  %v37_v21 = vld [vmem:[%s2184_s1 + $0xb0] sm:$0xff]  ;;  %v34_v28 = vld [vmem:[%s2184_s1 + $0x98] sm:$0xff]  ;;  %v35_v29 = vld [vmem:[%s2184_s1 + $0xa0] sm:$0xff]  ;;  %s1534_s19 = sshll.u32 %s1943_s18, 4  ;;  %s1535_s19 = int_to_ptr.vmem [resolvable:$true] %s1534_s19 }
   0x8   :  { %1646 = vmatmul.mubr.msk.f32.vlgmr.msra.gmra.mrb[0].mxu0 %vm48_vm0, %v13_v10  ;;  %1788 = vmatprep.subr.bf16.mxu1 %v1787_v14  ;;  %v1807_v22 = vpack.c.bf16 %v37_v21, %v36_v19  ;;  %v1542_v23 = vld [vmem:[%s2184_s1 + $0x10] ss:$0 sm:$0xff]  ;;  %v38_v30 = vld [vmem:[%s2184_s1 + $0xb8] sm:$0xff]  ;;  %v39_v31 = vld [vmem:[%s2184_s1 + $0xc0] sm:$0xff]  ;;  %v1803_v34 = vpack.c.bf16 %v35_v29, %v34_v28  ;;  %s1913_s20 = scalar_lea.vmem %s1535_s19, 128  ;;  %p1918_p1 = scmp.lt.s32.totalorder %s1535_s19, %s1535_s19 }
   0x9   :  { %1794 = vmatpush3.bf16.msra.mxu0 %v1791_v9  ;;  %v1811_v35 = vpack.c.bf16 %v39_v31, %v38_v30  ;;  %vm2052_vm4 = vmpackc.low %vm445_vm3, %vm445_vm3  ;;  %v2083_v3 = vld [vmem:[%s2183_s0 + $0x10] sm:$0xff]  ;;  %s1941_s0 = smov 112   ;;  %p1914_p0 = scmp.ne.s32.totalorder %s1535_s19, %s1913_s20 }
   0xa   :  { %1796 = vmatprep.subr.bf16.mxu0 %v1795_v16  ;;  %1790 = vmatpush3.bf16.msra.mxu1 %v1787_v14  ;;  %p1919_p2 = scmp.lt.s32.totalorder %s1913_s20, %s1913_s20 }
   0xb   :  { %1800 = vmatprep.subr.bf16.mxu1 %v1799_v20 }
   0xc   :  { %p1920_p3 = por %p1919_p2, %p1918_p1 }
   0xd   :  { %1798 = vmatpush3.bf16.msra.mxu0 %v1795_v16 }
   0xe   :  { %1808 = vmatprep.subr.bf16.mxu0 %v1807_v22  ;;  %p1921_p4 = pnand %p1920_p3, %p1914_p0 }
  0xdb   :  { %v1647_v24 = vpop.f32.mrb[0].mxu0 }
  0xdc   :  { %v127_v25 = vadd.f32 %v1647_v24, %v1542_v23  ;;  %v121_v26 = vpop.f32.mrb[1].mxu0 }
  0xdd   :  { %v122_v27 = vadd.f32 %v1542_v23, %v121_v26 }
  0xde   :  { %v131_v33 = vmax.f32 %v127_v25, 0.0 }
  0xdf   :  { %v130_v32 = vmax.f32 %v122_v27, 0.0 }
  0xe1   :  { %1656 = vmatprep.mubr.msk.f32.mxu1 %vm132_vm1, %v130_v32  ;;  %1667 = vmatprep.mubr.msk.f32.mxu0 %vm132_vm1, %v130_v32 }
  0xe2   :  { %1657 = vmatmul.mubr.msk.f32.vlgmr.msra.gmra.mrb[0].mxu1 %vm132_vm1, %v131_v33  ;;  %1668 = vmatmul.mubr.msk.f32.vlgmr.msra.gmra.mrb[2].mxu0 %vm132_vm1, %v131_v33 }
  0xe3   :  { %1802 = vmatpush3.bf16.msra.mxu1 %v1799_v20  ;;  %1810 = vmatpush3.bf16.msra.mxu0 %v1807_v22 }
  0xe4   :  { %1678 = vmatprep.mubr.msk.f32.mxu1 %vm132_vm1, %v130_v32  ;;  %1689 = vmatprep.mubr.msk.f32.mxu0 %vm132_vm1, %v130_v32 }
  0xe5   :  { %1804 = vmatprep.subr.bf16.mxu1 %v1803_v34  ;;  %1812 = vmatprep.subr.bf16.mxu0 %v1811_v35 }
  0xe7   :  { %1806 = vmatpush3.bf16.msra.mxu1 %v1803_v34  ;;  %1814 = vmatpush3.bf16.msra.mxu0 %v1811_v35 }
  0xe8   :  { %1815 = vmatprep.subr.bf16.mxu1 %v1937_v36  ;;  %1819 = vmatprep.subr.bf16.mxu0 %v1937_v36 }
  0xea   :  { %1679 = vmatmul.mubr.msk.f32.vlgmr.msra.gmra.mrb[2].mxu1 %vm132_vm1, %v131_v33  ;;  %1690 = vmatmul.mubr.msk.f32.vlgmr.msra.gmra.mrb[4].mxu0 %vm132_vm1, %v131_v33 }
  0xeb   :  { %1696 = vmatprep.mubr.msk.f32.mxu1 %vm1938_vm2, %v1939_v43  ;;  %1703 = vmatprep.mubr.msk.f32.mxu0 %vm1938_vm2, %v1939_v43 }
 0x1b5   :  { %v1658_v37 = vpop.f32.mrb[0].mxu1  ;;  %v1669_v38 = vpop.f32.mrb[2].mxu0 }
 0x1b6   :  { %v205_v39 = vpop.f32.mrb[1].mxu1  ;;  %v280_v40 = vpop.f32.mrb[3].mxu0 }
 0x1b7   :  { %v2034_v41 = vpack.i.bf16 %v1658_v37, %v205_v39  ;;  %v2036_v42 = vpack.i.bf16 %v1669_v38, %v280_v40 }
 0x1b9   :  { %1857 = vrot.lane.b32.xlu0 %v2034_v41, %s1940_s23 }
 0x1bd   :  { %v1680_v44 = vpop.f32.mrb[2].mxu1  ;;  %v1691_v45 = vpop.f32.mrb[4].mxu0  ;;  %1862 = vrot.lane.b32.xlu0 %v2036_v42, %s1940_s23 }
 0x1be   :  { %v430_v46 = vpop.f32.mrb[5].mxu0  ;;  %v355_v47 = vpop.f32.mrb[3].mxu1 }
 0x1bf   :  { %v2044_v48 = vpack.i.bf16 %v1691_v45, %v430_v46  ;;  %v2046_v49 = vpack.i.bf16 %v1680_v44, %v355_v47 }
 0x1c1   :  { %1867 = vrot.lane.b32.xlu1 %v2046_v49, %s1940_s23 }
 0x1c5   :  { %1872 = vrot.lane.b32.xlu1 %v2044_v48, %s1940_s23 }
 0x22b   :  { %v1858_v50 = vpop.permute.xlu0 %1857 }
 0x22c   :  { %v1860_v51 = vunpack.i.h.bf16 %v1858_v50  ;;  %v1859_v52 = vunpack.i.l.bf16 %v1858_v50 }
 0x22e   :  { %v1816_v54 = vpack.c.bf16 %v1860_v51, %v1859_v52 }
 0x22f   :  { %v1863_v55 = vpop.permute.xlu0 %1862 }
 0x230   :  { %v1865_v56 = vunpack.i.h.bf16 %v1863_v55  ;;  %v1864_v57 = vunpack.i.l.bf16 %v1863_v55  ;;  %1818 = vmatpush3.bf16.xpose.msk.msra.mxu1 %vm2052_vm4, %v1816_v54 }
 0x231   :  { %1823 = vmatprep.subr.bf16.mxu1 %v1937_v36 }
 0x232   :  { %v1820_v58 = vpack.c.bf16 %v1865_v56, %v1864_v57 }
 0x233   :  { %v1868_v59 = vpop.permute.xlu1 %1867 }
 0x234   :  { %v1870_v60 = vunpack.i.h.bf16 %v1868_v59  ;;  %v1869_v61 = vunpack.i.l.bf16 %v1868_v59  ;;  %1822 = vmatpush3.bf16.xpose.msk.msra.mxu0 %vm2052_vm4, %v1820_v58 }
 0x235   :  { %1827 = vmatprep.subr.bf16.mxu0 %v1937_v36 }
 0x236   :  { %v1824_v62 = vpack.c.bf16 %v1870_v60, %v1869_v61 }
 0x237   :  { %v1873_v63 = vpop.permute.xlu1 %1872  ;;  %1697 = vmatmul.mubr.msk.f32.vlgmr.msra.gmra.mrb[4].mxu1 %vm445_vm3, %v205_v39 }
 0x238   :  { %v1875_v0 = vunpack.i.h.bf16 %v1873_v63  ;;  %v1874_v1 = vunpack.i.l.bf16 %v1873_v63  ;;  %1826 = vmatpush3.bf16.xpose.msk.msra.mxu1 %vm2052_vm4, %v1824_v62  ;;  %1710 = vmatprep.mubr.msk.f32.mxu1 %vm1938_vm2, %v1939_v43 }
 0x239   :  { %1831 = vmatprep.subr.bf16.mxu1 %v1937_v36 }
 0x23a   :  { %v1828_v2 = vpack.c.bf16 %v1875_v0, %v1874_v1 }
 0x23b   :  { %1704 = vmatmul.mubr.msk.f32.vlgmr.msra.gmra.mrb[6].mxu0 %vm445_vm3, %v280_v40 }
 0x23c   :  { %1830 = vmatpush3.bf16.xpose.msk.msra.mxu0 %vm2052_vm4, %v1828_v2  ;;  %1717 = vmatprep.mubr.msk.f32.mxu0 %vm1938_vm2, %v1939_v43 }
 0x23d   :  { %1834 = vmatprep.subr.bf16.mxu0 %v1937_v36 }
 0x23f   :  { %1711 = vmatmul.mubr.msk.f32.vlgmr.msra.gmra.mrb[6].mxu1 %vm445_vm3, %v355_v47 }
 0x240   :  { %1724 = vmatprep.mubr.msk.f32.mxu1 %vm1938_vm2, %v1939_v43 }
 0x243   :  { %1718 = vmatmul.mubr.msk.f32.vlgmr.msra.gmra.mrb[8].mxu0 %vm445_vm3, %v430_v46 }
 0x244   :  { %1731 = vmatprep.mubr.msk.f32.mxu0 %vm1938_vm2, %v1939_v43 }
 0x30a   :  { %v518_v4 = vpop.f32.mrb[4].mxu1 }
 0x30b   :  { %v519_v5 = vadd.f32 %v518_v4, %v2083_v3  ;;  %v1698_v6 = vpop.f32.mrb[5].mxu1 }
 0x30d   :  { %v768_v7 = vsel %vm48_vm0, %v519_v5, -inf }
 0x30e   :  { %v600_v8 = vpop.f32.mrb[6].mxu0  ;;  %769 = vmax.xlane.f32.xlu0 %v768_v7 }
 0x30f   :  { %v601_v9 = vadd.f32 %v600_v8, %v2083_v3  ;;  %v1705_v10 = vpop.f32.mrb[7].mxu0 }
 0x311   :  { %v771_v11 = vsel %vm48_vm0, %v601_v9, -inf }
 0x312   :  { %772 = vmax.xlane.f32.xlu1 %v771_v11  ;;  %v682_v12 = vpop.f32.mrb[6].mxu1 }
 0x313   :  { %v683_v13 = vadd.f32 %v682_v12, %v2083_v3  ;;  %v1712_v14 = vpop.f32.mrb[7].mxu1 }
 0x315   :  { %v774_v15 = vsel %vm48_vm0, %v683_v13, -inf }
 0x316   :  { %v764_v16 = vpop.f32.mrb[8].mxu0  ;;  %775 = vmax.xlane.f32.xlu0 %v774_v15 }
 0x317   :  { %v765_v17 = vadd.f32 %v764_v16, %v2083_v3  ;;  %v1719_v18 = vpop.f32.mrb[9].mxu0 }
 0x319   :  { %v777_v19 = vsel %vm48_vm0, %v765_v17, -inf }
 0x31a   :  { %778 = vmax.xlane.f32.xlu0 %v777_v19  ;;  %v40_v19 = vld [vmem:[%s2184_s1 + $0xc8] sm:$0xff] }
 0x323   :  { %1877 = vrot.lane.b32.xlu1 %v2034_v41, %s1941_s0 }
 0x39b   :  { %v770_v20 = vpop.xlane.xlu0 %769 }
 0x39c   :  { %v780_v21 = vsub.f32 %v519_v5, %v770_v20  ;;  %v41_v20 = vld [vmem:[%s2184_s1 + $0xd0] sm:$0xff] }
 0x39e   :  { %v784_v22 = vmul.f32 1.442695, %v780_v21  ;;  %v42_v21 = vld [vmem:[%s2184_s1 + $0xd8] sm:$0xff] }
 0x39f   :  { %v773_v23 = vpop.xlane.xlu1 %772 }
 0x3a0   :  { %1897 = vpow2.f32 %v784_v22  ;;  %v781_v24 = vsub.f32 %v601_v9, %v773_v23 }
 0x3a2   :  { %v786_v25 = vmul.f32 1.442695, %v781_v24  ;;  %v43_v24 = vld [vmem:[%s2184_s1 + $0xe0] sm:$0xff] }
 0x3a3   :  { %v1878_v26 = vpop.permute.xlu1 %1877  ;;  %v776_v27 = vpop.xlane.xlu0 %775 }
 0x3a4   :  { %1899 = vpow2.f32 %v786_v25  ;;  %v1880_v28 = vunpack.i.h.bf16 %v1878_v26  ;;  %v1879_v29 = vunpack.i.l.bf16 %v1878_v26  ;;  %v782_v30 = vsub.f32 %v683_v13, %v776_v27 }
 0x3a6   :  { %v1832_v31 = vpack.c.bf16 %v1880_v28, %v1879_v29  ;;  %v788_v32 = vmul.f32 1.442695, %v782_v30 }
 0x3a7   :  { %v779_v33 = vpop.xlane.xlu0 %778 }
 0x3a8   :  { %1901 = vpow2.f32 %v788_v32  ;;  %v783_v34 = vsub.f32 %v765_v17, %v779_v33  ;;  %1833 = vmatpush3.bf16.msra.mxu1 %v1832_v31  ;;  %v20_v31 = vld [vmem:[%s2184_s1 + $0x28] sm:$0xff]  ;;  %v21_v32 = vld [vmem:[%s2184_s1 + $0x30] sm:$0xff] }
 0x3a9   :  { %1837 = vmatprep.subr.bf16.mxu1 %v1937_v36  ;;  %v1844_v33 = vpack.c.bf16 %v21_v32, %v20_v31 }
 0x3aa   :  { %v1898_v35 = vpop.eup %1897  ;;  %v790_v37 = vmul.f32 1.442695, %v783_v34  ;;  %v23_v34 = vld [vmem:[%s2184_s1 + $0x40] sm:$0xff] }
 0x3ab   :  { %v792_v38 = vsel %vm48_vm0, %v1898_v35, 0.0 }
 0x3ac   :  { %1903 = vpow2.f32 %v790_v37  ;;  %793 = vadd.xlane.f32.xlu1 %v792_v38  ;;  %v1942_v37 = vmov 16  }
 0x3ad   :  { %1896 = vset.pattern.permute.xlu0 %v1942_v37 }
 0x3ae   :  { %v1900_v39 = vpop.eup %1899 }
 0x3af   :  { %v795_v40 = vsel %vm48_vm0, %v1900_v39, 0.0 }
 0x3b0   :  { %796 = vadd.xlane.f32.xlu0 %v795_v40 }
 0x3b2   :  { %v1902_v41 = vpop.eup %1901 }
 0x3b3   :  { %v798_v44 = vsel %vm48_vm0, %v1902_v41, 0.0 }
 0x3b4   :  { %799 = vadd.xlane.f32.xlu1 %v798_v44 }
 0x3b6   :  { %v1904_v45 = vpop.eup %1903 }
 0x3b7   :  { %v801_v46 = vsel %vm48_vm0, %v1904_v45, 0.0 }
 0x3b8   :  { %802 = vadd.xlane.f32.xlu0 %v801_v46 }
 0x3c5   :  { %1887 = vrot.lane.b32.xlu1 %v2046_v49, %s1941_s0 }
 0x3c9   :  { %1892 = vrot.lane.b32.xlu1 %v2044_v48, %s1941_s0 }
 0x3ce   :  { %1882 = vrot.lane.b32.xlu0 %v2036_v42, %s1941_s0 }
 0x3d2   :  { %1523 = vperm.xlu0 %1896, %v2083_v3  }
 0x439   :  { %v794_v47 = vpop.xlane.xlu1 %793 }
 0x43a   :  { %1905 = vrcp.f32 %v794_v47 }
 0x43d   :  { %v797_v50 = vpop.xlane.xlu0 %796 }
 0x43e   :  { %1907 = vrcp.f32 %v797_v50 }
 0x441   :  { %v800_v51 = vpop.xlane.xlu1 %799 }
 0x442   :  { %1909 = vrcp.f32 %v800_v51 }
 0x444   :  { %v1906_v52 = vpop.eup %1905 }
 0x445   :  { %v808_v53 = vmul.f32 %v1906_v52, %v794_v47  ;;  %v1888_v54 = vpop.permute.xlu1 %1887  ;;  %v803_v55 = vpop.xlane.xlu0 %802 }
 0x446   :  { %1911 = vrcp.f32 %v803_v55  ;;  %v1890_v49 = vunpack.i.h.bf16 %v1888_v54  ;;  %v1889_v58 = vunpack.i.l.bf16 %v1888_v54 }
 0x447   :  { %v812_v56 = vsub.f32 2.0, %v808_v53  ;;  %v1573_v53 = vld [vmem:[%s2184_s1 + $0x18] ss:$0 sm:$0xff] }
 0x448   :  { %v1908_v57 = vpop.eup %1907  ;;  %v1838_v2 = vpack.c.bf16 %v1890_v49, %v1889_v58 }
 0x449   :  { %v816_v59 = vmul.f32 %v1906_v52, %v812_v56  ;;  %v809_v48 = vmul.f32 %v1908_v57, %v797_v50  ;;  %v1893_v60 = vpop.permute.xlu1 %1892  ;;  %v1883_v61 = vpop.permute.xlu0 %1882 }
 0x44a   :  { %v1885_v42 = vunpack.i.h.bf16 %v1883_v61  ;;  %v1884_v62 = vunpack.i.l.bf16 %v1883_v61  ;;  %v1895_v4 = vunpack.i.h.bf16 %v1893_v60  ;;  %v1894_v5 = vunpack.i.l.bf16 %v1893_v60 }
 0x44b   :  { %v820_v63 = vmul.f32 %v1898_v35, %v816_v59  ;;  %v813_v0 = vsub.f32 2.0, %v809_v48 }
 0x44c   :  { %v1910_v1 = vpop.eup %1909  ;;  %v1835_v6 = vpack.c.bf16 %v1885_v42, %v1884_v62  ;;  %v1841_v12 = vpack.c.bf16 %v1895_v4, %v1894_v5 }
 0x44d   :  { %v817_v7 = vmul.f32 %v1908_v57, %v813_v0  ;;  %v810_v8 = vmul.f32 %v1910_v1, %v800_v51  ;;  %1725 = vmatmul.mubr.msk.f32.vlgmr.msra.gmra.mrb[8].mxu1 %vm48_vm0, %v820_v63  ;;  %v1574_v57 = vld [vmem:[%s2184_s1 + $0x20] ss:$0 sm:$0xff] }
 0x44e   :  { %1839 = vmatpush3.bf16.msra.mxu1 %v1838_v2  ;;  %1836 = vmatpush3.bf16.msra.mxu0 %v1835_v6 }
 0x44f   :  { %v821_v9 = vmul.f32 %v1900_v39, %v817_v7  ;;  %v814_v10 = vsub.f32 2.0, %v810_v8  ;;  %1840 = vmatprep.subr.bf16.mxu0 %v1937_v36  ;;  %1738 = vmatprep.mubr.msk.f32.mxu1 %vm1938_vm2, %v1939_v43 }
 0x450   :  { %v1912_v11 = vpop.eup %1911  ;;  %1748 = vmatprep.subr.mxu1 %v1939_v43 }
 0x451   :  { %v818_v13 = vmul.f32 %v1910_v1, %v814_v10  ;;  %v811_v14 = vmul.f32 %v1912_v11, %v803_v55  ;;  %1732 = vmatmul.mubr.msk.f32.vlgmr.msra.gmra.mrb[10].mxu0 %vm48_vm0, %v821_v9  ;;  %v1524_v58 = vpop.permute.xlu0 %1523 }
 0x452   :  { %1842 = vmatpush3.bf16.msra.mxu0 %v1841_v12  ;;  %1745 = vmatprep.mubr.msk.f32.mxu0 %vm1938_vm2, %v1939_v43 }
 0x453   :  { %v822_v15 = vmul.f32 %v1902_v41, %v818_v13  ;;  %v815_v16 = vsub.f32 2.0, %v811_v14  ;;  %1753 = vmatprep.subr.mxu0 %v1939_v43 }
 0x455   :  { %v819_v17 = vmul.f32 %v1912_v11, %v815_v16  ;;  %1739 = vmatmul.mubr.msk.f32.vlgmr.msra.gmra.mrb[10].mxu1 %vm48_vm0, %v822_v15 }
 0x456   :  { %1750 = vmatprep.mubr.msk.f32.mxu1 %vm1938_vm2, %v1939_v43  ;;  %1749 = vmatpush3.msra.mxu1 %v40_v19 }
 0x457   :  { %v823_v18 = vmul.f32 %v1904_v45, %v819_v17  ;;  %1758 = vmatprep.subr.mxu1 %v1939_v43 }
 0x459   :  { %1746 = vmatmul.mubr.msk.f32.vlgmr.msra.gmra.mrb[12].mxu0 %vm48_vm0, %v823_v18 }
 0x45a   :  { %1755 = vmatprep.mubr.msk.f32.mxu0 %vm1938_vm2, %v1939_v43  ;;  %1754 = vmatpush3.msra.mxu0 %v41_v20 }
 0x45b   :  { %1763 = vmatprep.subr.mxu0 %v1939_v43 }
 0x520   :  { %v899_v22 = vpop.f32.mrb[8].mxu1 }
 0x521   :  { %v1726_v23 = vpop.f32.mrb[9].mxu1  ;;  %1751 = vmatmul.mubr.msk.f32.vlgmr.msra.gmra.mrb[12].mxu1 %vm445_vm3, %v899_v22 }
 0x522   :  { %1759 = vmatpush3.msra.mxu1 %v42_v21  ;;  %1760 = vmatprep.mubr.msk.f32.mxu1 %vm1938_vm2, %v1939_v43 }
 0x523   :  { %1843 = vmatprep.subr.bf16.mxu1 %v1937_v36 }
 0x524   :  { %v978_v25 = vpop.f32.mrb[10].mxu0 }
 0x525   :  { %v1733_v26 = vpop.f32.mrb[11].mxu0  ;;  %1756 = vmatmul.mubr.msk.f32.vlgmr.msra.gmra.mrb[14].mxu0 %vm445_vm3, %v978_v25 }
 0x526   :  { %1764 = vmatpush3.msra.mxu0 %v43_v24  ;;  %1765 = vmatprep.mubr.msk.f32.mxu0 %vm1938_vm2, %v1939_v43 }
 0x528   :  { %v1057_v27 = vpop.f32.mrb[10].mxu1 }
 0x529   :  { %v1740_v28 = vpop.f32.mrb[11].mxu1  ;;  %1761 = vmatmul.mubr.msk.f32.vlgmr.msra.gmra.mrb[14].mxu1 %vm445_vm3, %v1057_v27 }
 0x52a   :  { %1776 = vmatprep.mubr.msk.f32.mxu1 %vm1938_vm2, %v1939_v43  ;;  %1845 = vmatpush3.bf16.msra.mxu1 %v1844_v33  ;;  %v22_v43 = vld [vmem:[%s2184_s1 + $0x38] sm:$0xff] }
 0x52b   :  { %1846 = vmatprep.subr.bf16.mxu1 %v1937_v36  ;;  %v1847_v35 = vpack.c.bf16 %v23_v34, %v22_v43 }
 0x52c   :  { %v1136_v29 = vpop.f32.mrb[12].mxu0 }
 0x52d   :  { %v1747_v30 = vpop.f32.mrb[13].mxu0  ;;  %1766 = vmatmul.mubr.msk.f32.vlgmr.msra.gmra.mrb[16].mxu0 %vm445_vm3, %v1136_v29 }
 0x52e   :  { %1848 = vmatpush3.bf16.msra.mxu1 %v1847_v35 }
 0x5f4   :  { %v1209_v38 = vpop.f32.mrb[12].mxu1 }
 0x5f5   :  { %v1752_v39 = vpop.f32.mrb[13].mxu1  ;;  %v1432_v41 = vsel %vm132_vm1, %v1209_v38, 0.0 }
 0x5f8   :  { %v1282_v40 = vpop.f32.mrb[14].mxu0 }
 0x5f9   :  { %v1433_v36 = vsel %vm132_vm1, %v1282_v40, 0.0  ;;  %v1757_v44 = vpop.f32.mrb[15].mxu0 }
 0x5fa   :  { %v1434_v45 = vadd.f32 %v1433_v36, %v1432_v41 }
 0x5fc   :  { %v1355_v46 = vpop.f32.mrb[14].mxu1 }
 0x5fd   :  { %v1435_v47 = vsel %vm132_vm1, %v1355_v46, 0.0  ;;  %v1762_v50 = vpop.f32.mrb[15].mxu1 }
 0x5fe   :  { %v1436_v51 = vadd.f32 %v1435_v47, %v1434_v45 }
 0x600   :  { %v1428_v52 = vpop.f32.mrb[16].mxu0 }
 0x601   :  { %v1437_v3 = vsel %vm132_vm1, %v1428_v52, 0.0  ;;  %v1767_v54 = vpop.f32.mrb[17].mxu0 }
 0x602   :  { %v1438_v55 = vadd.f32 %v1437_v3, %v1436_v51 }
 0x604   :  { %v1443_v56 = vadd.f32 %v1573_v53, %v1438_v55 }
 0x606   :  { %1777 = vmatmul.mubr.msk.f32.vlgmr.msra.gmra.mrb[16].mxu1 %vm132_vm1, %v1443_v56 }
 0x6d9   :  { %v1517_v49 = vpop.f32.mrb[16].mxu1 }
 0x6da   :  { %v1518_v59 = vadd.f32 %v1574_v57, %v1517_v49  ;;  %v1778_v48 = vpop.f32.mrb[17].mxu1 }
 0x6dc   :  { %v1526_v60 = vmul.f32 %v1524_v58, %v1518_v59 }
 0x6de   :  { %1527 = vst [vmem:[#allocation2] sm:$0xff] %v1526_v60 }
 0x6df   :  { %1924 = shalt.err (!%p1921_p4)
}
 0x6e0   :  { %s1925_s1 = scalar_lea.hbm %s2185_s2, 128 }
 0x6e1   :  { %p1926_p5 = scmp.ne.s32.totalorder %s2185_s2, %s1925_s1  ;;  %p1929_p6 = scmp.lt.u32.totalorder %s1925_s1, %s2185_s2 }
 0x6e3   :  { %p1931_p7 = pnand %p1929_p6, %p1926_p5 }
 0x6e5   :  { %1934 = shalt.err (!%p1931_p7)
}
 0x6e6   :  { %1537 = dma.vmem_to_hbm [thread:$0]  %s1535_s19, 128, %s2185_s2, [#allocation3]  }
 0x6e7   :  { %1935 = dma.done.wait [#allocation3], 128  }
 0x6e8   :  { %1936 = vsyncadd [#allocation3], 4294967168 }
 0x6e9   :  { %1541 = vsyncpa [#allocation3], 1 }

</bundles_post_ra>
